<compile_context>
chip_gen: v7x
topology: tpu7x:2x2x1
jax: 0.10.0
libtpu: 0.0.40
codegen_flags: <defaults>
</compile_context>

<pallas_src>
import functools

import jax
import jax.numpy as jnp
from jax.experimental import pallas as pl
from jax.experimental.pallas import tpu as pltpu


# ----------------------------------------------------------------------------
# Bilinear interpolation matrix, PyTorch align_corners=True semantics.
# ----------------------------------------------------------------------------
def _bilinear_matrix_align_true(n_in, n_out):
    """(n_out, n_in) matrix M such that M @ x == 1-D linear upsample of x."""
    dst = jnp.arange(n_out, dtype=jnp.float32)
    scale = (n_in - 1) / (n_out - 1) if n_out > 1 else 0.0
    src = dst * scale
    i0 = jnp.clip(jnp.floor(src).astype(jnp.int32), 0, n_in - 1)
    i1 = jnp.minimum(i0 + 1, n_in - 1)
    frac = src - i0.astype(jnp.float32)
    oh0 = jax.nn.one_hot(i0, n_in, dtype=jnp.float32)
    oh1 = jax.nn.one_hot(i1, n_in, dtype=jnp.float32)
    return oh0 * (1.0 - frac)[:, None] + oh1 * frac[:, None]


def _round_up(x, m):
    return ((x + m - 1) // m) * m


# ----------------------------------------------------------------------------
# Fused kernel: upsample(x1) -> concat([x2, up(x1)]) -> conv3x3(pad=1) + bias
# ----------------------------------------------------------------------------
def _up_fused_kernel(x1_ref, x2_ref, ups_ref, w_ref, b_ref, o_ref, xflat_ref,
                     *, wout, interior):
    # x1_ref  : (1, C1, H*W)        low-res input, channels-first, spatial flat
    # x2_ref  : (1, C2, Hout*Wout)  skip tensor, channels-first, spatial flat
    # ups_ref : (H*W, Hout*Wout)    Kronecker bilinear interpolation matrix
    # w_ref   : (9, Cout, Cin)      conv weight, w_ref[kh*3+kw] = W[:, :, kh, kw]
    # b_ref   : (Cout, 1)           conv bias (column vector)
    # o_ref   : (1, Cout, Hout*Wout)
    # xflat_ref: (Cin, NROWS) VMEM  flattened H-padded concat buffer; pixel
    #            (h, w) of channel ci at lane interior + h*wout + w.
    C1 = x1_ref.shape[1]
    C2 = x2_ref.shape[1]
    HW = x2_ref.shape[2]
    Cin = C1 + C2
    Cout = o_ref.shape[1]
    NROWS = xflat_ref.shape[1]

    # ---- zero only the halo lanes (interior is fully overwritten below) ----
    xflat_ref[:, 0:interior] = jnp.zeros((Cin, interior), jnp.float32)
    xflat_ref[:, interior + HW:NROWS] = jnp.zeros(
        (Cin, NROWS - interior - HW), jnp.float32)

    # ---- concat part 1: x2 occupies channels [0, C2) ----
    xflat_ref[0:C2, interior:interior + HW] = x2_ref[0]

    # ---- concat part 2: bilinear-upsampled x1 occupies channels [C2, Cin) ----
    # One MXU matmul against the precomputed (H*W, Hout*Wout) interpolation
    # matrix keeps channels in M and spatial flat in lanes (no relayouts).
    up = jnp.dot(x1_ref[0], ups_ref[...], preferred_element_type=jnp.float32)
    xflat_ref[C2:Cin, interior:interior + HW] = up

    # ---- 3x3 conv: 9 tap-wise MXU matmuls (Cout,Cin)@(Cin,HW) -> (Cout,HW) ----
    # W-edge wraparound masks (flattened layout has no W padding).
    col = jax.lax.broadcasted_iota(jnp.int32, (Cin, HW), 1) % wout
    left_ok = col != 0            # tap reads (w-1): invalid at w == 0
    right_ok = col != (wout - 1)  # tap reads (w+1): invalid at w == wout-1

    acc = jnp.zeros((Cout, HW), jnp.float32)
    for kh in range(3):           # 9 static iterations; channels live in the
        for kw in range(3):       # matmul, so vreg pressure stays bounded.
            start = interior + (kh - 1) * wout + (kw - 1)
            xs = xflat_ref[:, start:start + HW]          # (Cin, HW) lane slice
            if kw == 0:
                xs = jnp.where(left_ok, xs, 0.0)
            elif kw == 2:
                xs = jnp.where(right_ok, xs, 0.0)
            # TODO(synk): cast xs / weights to bf16 once MXU-bound at scale.
            acc = acc + jnp.dot(w_ref[kh * 3 + kw], xs,
                                preferred_element_type=jnp.float32)

    # ---- single fused epilogue: bias add + one lane-dense store ----
    o_ref[0] = acc + b_ref[...]


@jax.jit
def up_forward(x1, x2, w, b):
    """Pallas implementation of Up.forward.

    x1: (B, C1, H, W) f32   -> upsampled x2 bilinearly (align_corners=True)
    x2: (B, C2, 2H, 2W) f32 -> concatenated in front of up(x1)
    w : (Cout, C1+C2, 3, 3) f32   Conv2d weight
    b : (Cout,) f32               Conv2d bias
    returns (B, Cout, 2H, 2W) f32
    """
    B, C1, H, W = x1.shape
    _, C2, Hout, Wout = x2.shape
    Cout, Cin = w.shape[0], w.shape[1]
    assert Hout == 2 * H and Wout == 2 * W and Cin == C1 + C2

    HW_in = H * W
    HW = Hout * Wout
    # Interior lane offset of the flattened concat buffer: >= Wout + 1 so all
    # tap slices stay in-bounds, rounded to 128 so the interior writes and the
    # centre-tap load are lane-aligned.
    interior = _round_up(Wout + 1, 128)
    nrows = interior + HW + _round_up(Wout + 1, 128)

    # Separable interpolation matrices (static shapes -> folded constants),
    # combined into one Kronecker operator so the kernel upsamples directly
    # into the channels-first flattened layout.
    A = _bilinear_matrix_align_true(H, Hout)         # (Hout, H)
    Bw = _bilinear_matrix_align_true(W, Wout)        # (Wout, W)
    ups_t = jnp.kron(A, Bw).T                        # (H*W, Hout*Wout)

    # Conv weight as a (9, Cout, Cin) VMEM tile: w9[kh*3+kw] = w[:, :, kh, kw].
    w9 = jnp.transpose(w, (2, 3, 0, 1)).reshape(9, Cout, Cin)
    b2 = b.reshape(Cout, 1)

    # Free, metadata-only reshapes (NCHW stays channels-first).
    x1f = x1.reshape(B, C1, HW_in)
    x2f = x2.reshape(B, C2, HW)

    kernel = functools.partial(_up_fused_kernel, wout=Wout, interior=interior)

    out_flat = pl.pallas_call(
        kernel,
        out_shape=jax.ShapeDtypeStruct((B, Cout, HW), jnp.float32),
        grid_spec=pltpu.PrefetchScalarGridSpec(
            num_scalar_prefetch=0,
            grid=(B,),
            in_specs=[
                pl.BlockSpec((1, C1, HW_in), lambda bi: (bi, 0, 0)),
                pl.BlockSpec((1, C2, HW), lambda bi: (bi, 0, 0)),
                pl.BlockSpec((HW_in, HW), lambda bi: (0, 0)),
                pl.BlockSpec((9, Cout, Cin), lambda bi: (0, 0, 0)),
                pl.BlockSpec((Cout, 1), lambda bi: (0, 0)),
            ],
            out_specs=pl.BlockSpec((1, Cout, HW), lambda bi: (bi, 0, 0)),
            scratch_shapes=[pltpu.VMEM((Cin, nrows), jnp.float32)],
        ),
        compiler_params=pltpu.CompilerParams(
            dimension_semantics=("parallel",)),
    )(x1f, x2f, ups_t, w9, b2)

    return out_flat.reshape(B, Cout, Hout, Wout)


if __name__ == "__main__":
    B, C1, C2, Cout = 2, 4, 4, 4           # in_channels = C1 + C2 = 8
    H = W = 8
    Cin = C1 + C2

    key = jax.random.PRNGKey(0)
    k1, k2, kw, kb = jax.random.split(key, 4)
    x1 = jax.random.normal(k1, (B, C1, H, W), dtype=jnp.float32)
    x2 = jax.random.normal(k2, (B, C2, 2 * H, 2 * W), dtype=jnp.float32)
    w = jax.random.normal(kw, (Cout, Cin, 3, 3), dtype=jnp.float32) * 0.1
    b = jax.random.normal(kb, (Cout,), dtype=jnp.float32) * 0.1

    out = up_forward(x1, x2, w, b)
    out = jax.block_until_ready(out)
    assert out.shape == (B, Cout, 2 * H, 2 * W), out.shape

    # Pure-JAX reference: bilinear (align_corners=True) via the same separable
    # interpolation matrices, concat, then lax conv (SAME padding for k=3,p=1).
    A = _bilinear_matrix_align_true(H, 2 * H)
    Bt = _bilinear_matrix_align_true(W, 2 * W).T
    x1_up = jnp.einsum("oh,bchw,wq->bcoq", A, x1, Bt)
    xcat = jnp.concatenate([x2, x1_up], axis=1)
    ref = jax.lax.conv_general_dilated(
        xcat, w, window_strides=(1, 1), padding="SAME",
        dimension_numbers=("NCHW", "OIHW", "NCHW"))
    ref = ref + b[None, :, None, None]

    err = float(jnp.max(jnp.abs(out - ref)))
    assert jnp.allclose(out, ref, atol=1e-3, rtol=1e-3), err

    print("KERNEL_OK")
</pallas_src>

<mosaic_0001>
module attributes {stable_mosaic.version = 11 : i64} {
  func.func @_up_fused_kernel(%arg0: i32, %arg1: memref<1x4x64xf32, #tpu.memory_space<vmem>>, %arg2: memref<1x4x256xf32, #tpu.memory_space<vmem>>, %arg3: memref<64x256xf32, #tpu.memory_space<vmem>>, %arg4: memref<9x4x8xf32, #tpu.memory_space<vmem>>, %arg5: memref<4x1xf32, #tpu.memory_space<vmem>>, %arg6: memref<1x4x256xf32, #tpu.memory_space<vmem>>, %arg7: memref<8x512xf32, #tpu.memory_space<vmem>>) attributes {dimension_semantics = [#tpu.dimension_semantics<parallel>], iteration_bounds = array<i64: 2>, scalar_prefetch = 0 : i64, scratch_operands = 1 : i64, tpu.core_type = #tpu.core_type<tc>, window_params = [{transform_indices = @transform_0, window_bounds = array<i64: 1, 4, 64>}, {transform_indices = @transform_1, window_bounds = array<i64: 1, 4, 256>}, {pipeline_mode = #tpu.pipeline_mode<synchronous>, transform_indices = @transform_2, window_bounds = array<i64: 64, 256>}, {pipeline_mode = #tpu.pipeline_mode<synchronous>, transform_indices = @transform_3, window_bounds = array<i64: 9, 4, 8>}, {pipeline_mode = #tpu.pipeline_mode<synchronous>, transform_indices = @transform_4, window_bounds = array<i64: 4, 1>}, {transform_indices = @transform_5, window_bounds = array<i64: 1, 4, 256>}]} {
    %cst = arith.constant 0.000000e+00 : f32
    %0 = vector.broadcast %cst : f32 to vector<8x128xf32>
    %c0 = arith.constant 0 : index
    %c0_0 = arith.constant 0 : index
    %1 = vector.load %arg7[%c0, %c0_0] : memref<8x512xf32, #tpu.memory_space<vmem>>, vector<8x128xf32>
    tpu.vector_store %arg7[%c0, %c0_0], %0 {strides = array<i32>} : memref<8x512xf32, #tpu.memory_space<vmem>>, vector<8x128xf32>,
    %cst_1 = arith.constant 0.000000e+00 : f32
    %2 = vector.broadcast %cst_1 : f32 to vector<8x128xf32>
    %c0_2 = arith.constant 0 : index
    %c384 = arith.constant 384 : index
    %3 = vector.load %arg7[%c0_2, %c384] : memref<8x512xf32, #tpu.memory_space<vmem>>, vector<8x128xf32>
    tpu.vector_store %arg7[%c0_2, %c384], %2 {strides = array<i32>} : memref<8x512xf32, #tpu.memory_space<vmem>>, vector<8x128xf32>,
    %c0_3 = arith.constant 0 : index
    %c0_4 = arith.constant 0 : index
    %c0_5 = arith.constant 0 : index
    %4 = vector.load %arg2[%c0_3, %c0_4, %c0_5] : memref<1x4x256xf32, #tpu.memory_space<vmem>>, vector<1x4x256xf32>
    %5 = vector.shape_cast %4 : vector<1x4x256xf32> to vector<4x256xf32>
    %c0_6 = arith.constant 0 : index
    %c128 = arith.constant 128 : index
    %6 = vector.load %arg7[%c0_6, %c128] : memref<8x512xf32, #tpu.memory_space<vmem>>, vector<4x256xf32>
    tpu.vector_store %arg7[%c0_6, %c128], %5 {strides = array<i32>} : memref<8x512xf32, #tpu.memory_space<vmem>>, vector<4x256xf32>,
    %c0_7 = arith.constant 0 : index
    %c0_8 = arith.constant 0 : index
    %c0_9 = arith.constant 0 : index
    %7 = vector.load %arg1[%c0_7, %c0_8, %c0_9] : memref<1x4x64xf32, #tpu.memory_space<vmem>>, vector<1x4x64xf32>
    %8 = vector.shape_cast %7 : vector<1x4x64xf32> to vector<4x64xf32>
    %c0_10 = arith.constant 0 : index
    %c0_11 = arith.constant 0 : index
    %9 = vector.load %arg3[%c0_10, %c0_11] : memref<64x256xf32, #tpu.memory_space<vmem>>, vector<64x256xf32>
    %cst_12 = arith.constant dense<0.000000e+00> : vector<4x256xf32>
    %10 = tpu.matmul %8, %9, %cst_12 {dimension_numbers = #tpu.dot_dimension_numbers<[1], [0], [0], [1], [0, 0, 1, 1], [], []>} : vector<4x64xf32>, vector<64x256xf32>, vector<4x256xf32> -> vector<4x256xf32>
    %c4 = arith.constant 4 : index
    %c128_13 = arith.constant 128 : index
    %11 = vector.load %arg7[%c4, %c128_13] : memref<8x512xf32, #tpu.memory_space<vmem>>, vector<4x256xf32>
    tpu.vector_store %arg7[%c4, %c128_13], %10 {strides = array<i32>} : memref<8x512xf32, #tpu.memory_space<vmem>>, vector<4x256xf32>,
    %12 = tpu.iota {dimensions = array<i32: 1>} : vector<8x256xi32>
    %c16_i32 = arith.constant 16 : i32
    %c0_i32 = arith.constant 0 : i32
    %13 = arith.cmpi eq, %c16_i32, %c0_i32 : i32
    %c1_i32 = arith.constant 1 : i32
    %14 = arith.select %13, %c1_i32, %c16_i32 : i32
    %15 = vector.broadcast %14 : i32 to vector<8x256xi32>
    %16 = arith.remsi %12, %15 : vector<8x256xi32>
    %c0_i32_14 = arith.constant 0 : i32
    %17 = vector.broadcast %c0_i32_14 : i32 to vector<8x256xi32>
    %18 = arith.cmpi ne, %16, %17 : vector<8x256xi32>
    %c0_i32_15 = arith.constant 0 : i32
    %19 = vector.broadcast %c0_i32_15 : i32 to vector<8x256xi32>
    %20 = arith.cmpi slt, %16, %19 : vector<8x256xi32>
    %c0_i32_16 = arith.constant 0 : i32
    %21 = arith.cmpi slt, %14, %c0_i32_16 : i32
    %22 = vector.broadcast %21 : i1 to vector<8x256xi1>
    %23 = vector.broadcast %22 : vector<8x256xi1> to vector<8x256xi1>
    %24 = arith.xori %20, %23 : vector<8x256xi1>
    %25 = arith.andi %24, %18 : vector<8x256xi1>
    %26 = vector.broadcast %14 : i32 to vector<8x256xi32>
    %27 = arith.addi %16, %26 : vector<8x256xi32>
    %28 = arith.select %25, %27, %16 : vector<8x256xi1>, vector<8x256xi32>
    %c0_i32_17 = arith.constant 0 : i32
    %29 = vector.broadcast %c0_i32_17 : i32 to vector<8x256xi32>
    %30 = arith.cmpi ne, %28, %29 : vector<8x256xi32>
    %c15_i32 = arith.constant 15 : i32
    %31 = vector.broadcast %c15_i32 : i32 to vector<8x256xi32>
    %32 = arith.cmpi ne, %28, %31 : vector<8x256xi32>
    %cst_18 = arith.constant 0.000000e+00 : f32
    %33 = vector.broadcast %cst_18 : f32 to vector<4x256xf32>
    %c0_19 = arith.constant 0 : index
    %c111 = arith.constant 111 : index
    %34 = vector.load %arg7[%c0_19, %c111] : memref<8x512xf32, #tpu.memory_space<vmem>>, vector<8x256xf32>
    %cst_20 = arith.constant 0.000000e+00 : f32
    %35 = vector.broadcast %cst_20 : f32 to vector<8x256xf32>
    %36 = arith.select %30, %34, %35 : vector<8x256xi1>, vector<8x256xf32>
    %c0_21 = arith.constant 0 : index
    %c0_22 = arith.constant 0 : index
    %c0_23 = arith.constant 0 : index
    %37 = vector.load %arg4[%c0_21, %c0_22, %c0_23] : memref<9x4x8xf32, #tpu.memory_space<vmem>>, vector<1x4x8xf32>
    %38 = vector.shape_cast %37 : vector<1x4x8xf32> to vector<4x8xf32>
    %cst_24 = arith.constant dense<0.000000e+00> : vector<4x256xf32>
    %39 = tpu.matmul %38, %36, %cst_24 {dimension_numbers = #tpu.dot_dimension_numbers<[1], [0], [0], [1], [0, 0, 1, 1], [], []>} : vector<4x8xf32>, vector<8x256xf32>, vector<4x256xf32> -> vector<4x256xf32>
    %40 = arith.addf %33, %39 : vector<4x256xf32>
    %c0_25 = arith.constant 0 : index
    %c112 = arith.constant 112 : index
    %41 = vector.load %arg7[%c0_25, %c112] : memref<8x512xf32, #tpu.memory_space<vmem>>, vector<8x256xf32>
    %c1 = arith.constant 1 : index
    %c0_26 = arith.constant 0 : index
    %c0_27 = arith.constant 0 : index
    %42 = vector.load %arg4[%c1, %c0_26, %c0_27] : memref<9x4x8xf32, #tpu.memory_space<vmem>>, vector<1x4x8xf32>
    %43 = vector.shape_cast %42 : vector<1x4x8xf32> to vector<4x8xf32>
    %cst_28 = arith.constant dense<0.000000e+00> : vector<4x256xf32>
    %44 = tpu.matmul %43, %41, %cst_28 {dimension_numbers = #tpu.dot_dimension_numbers<[1], [0], [0], [1], [0, 0, 1, 1], [], []>} : vector<4x8xf32>, vector<8x256xf32>, vector<4x256xf32> -> vector<4x256xf32>
    %45 = arith.addf %40, %44 : vector<4x256xf32>
    %c0_29 = arith.constant 0 : index
    %c113 = arith.constant 113 : index
    %46 = vector.load %arg7[%c0_29, %c113] : memref<8x512xf32, #tpu.memory_space<vmem>>, vector<8x256xf32>
    %cst_30 = arith.constant 0.000000e+00 : f32
    %47 = vector.broadcast %cst_30 : f32 to vector<8x256xf32>
    %48 = arith.select %32, %46, %47 : vector<8x256xi1>, vector<8x256xf32>
    %c2 = arith.constant 2 : index
    %c0_31 = arith.constant 0 : index
    %c0_32 = arith.constant 0 : index
    %49 = vector.load %arg4[%c2, %c0_31, %c0_32] : memref<9x4x8xf32, #tpu.memory_space<vmem>>, vector<1x4x8xf32>
    %50 = vector.shape_cast %49 : vector<1x4x8xf32> to vector<4x8xf32>
    %cst_33 = arith.constant dense<0.000000e+00> : vector<4x256xf32>
    %51 = tpu.matmul %50, %48, %cst_33 {dimension_numbers = #tpu.dot_dimension_numbers<[1], [0], [0], [1], [0, 0, 1, 1], [], []>} : vector<4x8xf32>, vector<8x256xf32>, vector<4x256xf32> -> vector<4x256xf32>
    %52 = arith.addf %45, %51 : vector<4x256xf32>
    %c0_34 = arith.constant 0 : index
    %c127 = arith.constant 127 : index
    %53 = vector.load %arg7[%c0_34, %c127] : memref<8x512xf32, #tpu.memory_space<vmem>>, vector<8x256xf32>
    %cst_35 = arith.constant 0.000000e+00 : f32
    %54 = vector.broadcast %cst_35 : f32 to vector<8x256xf32>
    %55 = arith.select %30, %53, %54 : vector<8x256xi1>, vector<8x256xf32>
    %c3 = arith.constant 3 : index
    %c0_36 = arith.constant 0 : index
    %c0_37 = arith.constant 0 : index
    %56 = vector.load %arg4[%c3, %c0_36, %c0_37] : memref<9x4x8xf32, #tpu.memory_space<vmem>>, vector<1x4x8xf32>
    %57 = vector.shape_cast %56 : vector<1x4x8xf32> to vector<4x8xf32>
    %cst_38 = arith.constant dense<0.000000e+00> : vector<4x256xf32>
    %58 = tpu.matmul %57, %55, %cst_38 {dimension_numbers = #tpu.dot_dimension_numbers<[1], [0], [0], [1], [0, 0, 1, 1], [], []>} : vector<4x8xf32>, vector<8x256xf32>, vector<4x256xf32> -> vector<4x256xf32>
    %59 = arith.addf %52, %58 : vector<4x256xf32>
    %c0_39 = arith.constant 0 : index
    %c128_40 = arith.constant 128 : index
    %60 = vector.load %arg7[%c0_39, %c128_40] : memref<8x512xf32, #tpu.memory_space<vmem>>, vector<8x256xf32>
    %c4_41 = arith.constant 4 : index
    %c0_42 = arith.constant 0 : index
    %c0_43 = arith.constant 0 : index
    %61 = vector.load %arg4[%c4_41, %c0_42, %c0_43] : memref<9x4x8xf32, #tpu.memory_space<vmem>>, vector<1x4x8xf32>
    %62 = vector.shape_cast %61 : vector<1x4x8xf32> to vector<4x8xf32>
    %cst_44 = arith.constant dense<0.000000e+00> : vector<4x256xf32>
    %63 = tpu.matmul %62, %60, %cst_44 {dimension_numbers = #tpu.dot_dimension_numbers<[1], [0], [0], [1], [0, 0, 1, 1], [], []>} : vector<4x8xf32>, vector<8x256xf32>, vector<4x256xf32> -> vector<4x256xf32>
    %64 = arith.addf %59, %63 : vector<4x256xf32>
    %c0_45 = arith.constant 0 : index
    %c129 = arith.constant 129 : index
    %65 = vector.load %arg7[%c0_45, %c129] : memref<8x512xf32, #tpu.memory_space<vmem>>, vector<8x256xf32>
    %cst_46 = arith.constant 0.000000e+00 : f32
    %66 = vector.broadcast %cst_46 : f32 to vector<8x256xf32>
    %67 = arith.select %32, %65, %66 : vector<8x256xi1>, vector<8x256xf32>
    %c5 = arith.constant 5 : index
    %c0_47 = arith.constant 0 : index
    %c0_48 = arith.constant 0 : index
    %68 = vector.load %arg4[%c5, %c0_47, %c0_48] : memref<9x4x8xf32, #tpu.memory_space<vmem>>, vector<1x4x8xf32>
    %69 = vector.shape_cast %68 : vector<1x4x8xf32> to vector<4x8xf32>
    %cst_49 = arith.constant dense<0.000000e+00> : vector<4x256xf32>
    %70 = tpu.matmul %69, %67, %cst_49 {dimension_numbers = #tpu.dot_dimension_numbers<[1], [0], [0], [1], [0, 0, 1, 1], [], []>} : vector<4x8xf32>, vector<8x256xf32>, vector<4x256xf32> -> vector<4x256xf32>
    %71 = arith.addf %64, %70 : vector<4x256xf32>
    %c0_50 = arith.constant 0 : index
    %c143 = arith.constant 143 : index
    %72 = vector.load %arg7[%c0_50, %c143] : memref<8x512xf32, #tpu.memory_space<vmem>>, vector<8x256xf32>
    %cst_51 = arith.constant 0.000000e+00 : f32
    %73 = vector.broadcast %cst_51 : f32 to vector<8x256xf32>
    %74 = arith.select %30, %72, %73 : vector<8x256xi1>, vector<8x256xf32>
    %c6 = arith.constant 6 : index
    %c0_52 = arith.constant 0 : index
    %c0_53 = arith.constant 0 : index
    %75 = vector.load %arg4[%c6, %c0_52, %c0_53] : memref<9x4x8xf32, #tpu.memory_space<vmem>>, vector<1x4x8xf32>
    %76 = vector.shape_cast %75 : vector<1x4x8xf32> to vector<4x8xf32>
    %cst_54 = arith.constant dense<0.000000e+00> : vector<4x256xf32>
    %77 = tpu.matmul %76, %74, %cst_54 {dimension_numbers = #tpu.dot_dimension_numbers<[1], [0], [0], [1], [0, 0, 1, 1], [], []>} : vector<4x8xf32>, vector<8x256xf32>, vector<4x256xf32> -> vector<4x256xf32>
    %78 = arith.addf %71, %77 : vector<4x256xf32>
    %c0_55 = arith.constant 0 : index
    %c144 = arith.constant 144 : index
    %79 = vector.load %arg7[%c0_55, %c144] : memref<8x512xf32, #tpu.memory_space<vmem>>, vector<8x256xf32>
    %c7 = arith.constant 7 : index
    %c0_56 = arith.constant 0 : index
    %c0_57 = arith.constant 0 : index
    %80 = vector.load %arg4[%c7, %c0_56, %c0_57] : memref<9x4x8xf32, #tpu.memory_space<vmem>>, vector<1x4x8xf32>
    %81 = vector.shape_cast %80 : vector<1x4x8xf32> to vector<4x8xf32>
    %cst_58 = arith.constant dense<0.000000e+00> : vector<4x256xf32>
    %82 = tpu.matmul %81, %79, %cst_58 {dimension_numbers = #tpu.dot_dimension_numbers<[1], [0], [0], [1], [0, 0, 1, 1], [], []>} : vector<4x8xf32>, vector<8x256xf32>, vector<4x256xf32> -> vector<4x256xf32>
    %83 = arith.addf %78, %82 : vector<4x256xf32>
    %c0_59 = arith.constant 0 : index
    %c145 = arith.constant 145 : index
    %84 = vector.load %arg7[%c0_59, %c145] : memref<8x512xf32, #tpu.memory_space<vmem>>, vector<8x256xf32>
    %cst_60 = arith.constant 0.000000e+00 : f32
    %85 = vector.broadcast %cst_60 : f32 to vector<8x256xf32>
    %86 = arith.select %32, %84, %85 : vector<8x256xi1>, vector<8x256xf32>
    %c8 = arith.constant 8 : index
    %c0_61 = arith.constant 0 : index
    %c0_62 = arith.constant 0 : index
    %87 = vector.load %arg4[%c8, %c0_61, %c0_62] : memref<9x4x8xf32, #tpu.memory_space<vmem>>, vector<1x4x8xf32>
    %88 = vector.shape_cast %87 : vector<1x4x8xf32> to vector<4x8xf32>
    %cst_63 = arith.constant dense<0.000000e+00> : vector<4x256xf32>
    %89 = tpu.matmul %88, %86, %cst_63 {dimension_numbers = #tpu.dot_dimension_numbers<[1], [0], [0], [1], [0, 0, 1, 1], [], []>} : vector<4x8xf32>, vector<8x256xf32>, vector<4x256xf32> -> vector<4x256xf32>
    %90 = arith.addf %83, %89 : vector<4x256xf32>
    %c0_64 = arith.constant 0 : index
    %c0_65 = arith.constant 0 : index
    %91 = vector.load %arg5[%c0_64, %c0_65] : memref<4x1xf32, #tpu.memory_space<vmem>>, vector<4x1xf32>
    %92 = vector.broadcast %91 : vector<4x1xf32> to vector<4x256xf32>
    %93 = arith.addf %90, %92 : vector<4x256xf32>
    %c0_66 = arith.constant 0 : index
    %c0_67 = arith.constant 0 : index
    %c0_68 = arith.constant 0 : index
    %94 = vector.load %arg6[%c0_66, %c0_67, %c0_68] : memref<1x4x256xf32, #tpu.memory_space<vmem>>, vector<1x4x256xf32>
    %95 = vector.shape_cast %94 : vector<1x4x256xf32> to vector<4x256xf32>
    %96 = vector.shape_cast %93 : vector<4x256xf32> to vector<1x4x256xf32>
    tpu.vector_store %arg6[%c0_66, %c0_67, %c0_68], %96 {strides = array<i32>} : memref<1x4x256xf32, #tpu.memory_space<vmem>>, vector<1x4x256xf32>,
    return
  }
  func.func @transform_0(%arg0: i32) -> (i32, i32, i32) {
    %c0_i32 = arith.constant 0 : i32
    %c0_i32_0 = arith.constant 0 : i32
    %c0_i32_1 = arith.constant 0 : i32
    return %arg0, %c0_i32, %c0_i32_0 : i32, i32, i32
  }
  func.func @transform_1(%arg0: i32) -> (i32, i32, i32) {
    %c0_i32 = arith.constant 0 : i32
    %c0_i32_0 = arith.constant 0 : i32
    %c0_i32_1 = arith.constant 0 : i32
    return %arg0, %c0_i32, %c0_i32_0 : i32, i32, i32
  }
  func.func @transform_2(%arg0: i32) -> (i32, i32) {
    %c0_i32 = arith.constant 0 : i32
    %c0_i32_0 = arith.constant 0 : i32
    %c0_i32_1 = arith.constant 0 : i32
    return %c0_i32, %c0_i32_0 : i32, i32
  }
  func.func @transform_3(%arg0: i32) -> (i32, i32, i32) {
    %c0_i32 = arith.constant 0 : i32
    %c0_i32_0 = arith.constant 0 : i32
    %c0_i32_1 = arith.constant 0 : i32
    %c0_i32_2 = arith.constant 0 : i32
    return %c0_i32, %c0_i32_0, %c0_i32_1 : i32, i32, i32
  }
  func.func @transform_4(%arg0: i32) -> (i32, i32) {
    %c0_i32 = arith.constant 0 : i32
    %c0_i32_0 = arith.constant 0 : i32
    %c0_i32_1 = arith.constant 0 : i32
    return %c0_i32, %c0_i32_0 : i32, i32
  }
  func.func @transform_5(%arg0: i32) -> (i32, i32, i32) {
    %c0_i32 = arith.constant 0 : i32
    %c0_i32_0 = arith.constant 0 : i32
    %c0_i32_1 = arith.constant 0 : i32
    return %arg0, %c0_i32, %c0_i32_0 : i32, i32, i32
  }
}

</mosaic_0001>

<bundles_post_ra>
// kernel: up_forward.1
= control target key start
LH: loop header
LB: loop body
LE: loop exit
PB: predicated region body
PF: predicated region fallthrough
CT: control target
= control target key end

     0   :  { %s1415_s18 = smov 0   ;;  %s1605_s0 = inlined_call_operand.vmem [shape: f32[2,4,64], index: 0, kind: input, shape index: {}]   ;;  %s1606_s1 = inlined_call_operand.vmem [shape: f32[2,4,256], index: 1, kind: input, shape index: {}]   ;;  %s1607_s2 = inlined_call_operand.vmem [shape: f32[64,256], index: 2, kind: input, shape index: {}]   ;;  %s1608_s3 = inlined_call_operand.vmem [shape: f32[9,4,8], index: 3, kind: input, shape index: {}]   ;;  %s1609_s4 = inlined_call_operand.vmem [shape: f32[4,1], index: 4, kind: input, shape index: {}]   ;;  %s1610_s5 = inlined_call_operand.vmem [shape: f32[2,4,256], index: 5, kind: output, shape index: {}]  }
   0x1 LB: > { %s1271_s19 = sadd.s32 4294967295, %s1373_s18   ;;  %p1275_p0 = scmp.ge.s32.totalorder %s1373_s18, 1  ;;  %s1373_s18 = sphi %s1415_s18, %s15_s18  }
   0x2   : > { %p196_p1 = scmp.lt.s32.totalorder %s1373_s18, 3 }
   0x4   : > { %p197_p2 = pnand %p1275_p0, %p196_p1 }
   0x5   : > { %v252_v0 = vld [vmem:[%s1607_s2 + $0x8] sm:$0xff] (!%p197_p2)  ;;  %v254_v1 = vld [vmem:[%s1607_s2 + $0x18] sm:$0xff] (!%p197_p2)  ;;  %v251_v2 = vld [vmem:[%s1607_s2] sm:$0xff] (!%p197_p2)  ;;  %p228_p3 = scmp.lt.s32.totalorder (!%p197_p2), %s1271_s19, 1  ;;  %v1375_v7 = vmov (!%p197_p2), 0.0   ;;  %vm267_vm0 = vcmask (!%p197_p2), 523264   ;;  %v350_v36 = vlaneseq (!%p197_p2) }
   0x6   : > { %200 = sbr.rel (%p197_p2) target bundleno = 636 (0x27c), region = 40  ;;  %v1315_v3 = vpack.c.bf16 (!%p197_p2), %v254_v1, %v252_v0  ;;  %v253_v4 = vld [vmem:[%s1607_s2 + $0x10] sm:$0xff] (!%p197_p2)  ;;  %v256_v5 = vld [vmem:[%s1607_s2 + $0x28] sm:$0xff] (!%p197_p2)  ;;  %v258_v6 = vld [vmem:[%s1607_s2 + $0x38] sm:$0xff] (!%p197_p2)  ;;  %335 = vmatprep.mubr.f32.mxu0 (!%p197_p2), %v1375_v7  ;;  %645 = vmatprep.mubr.f32.mxu1 (!%p197_p2), %v1375_v7  ;;  %s1376_s12 = smov (!%p197_p2), 15   ;;  %v1384_v34 = vmov (!%p197_p2), 0  }
   0x7   : > { %v1317_v8 = vpack.c.bf16 (!%p197_p2), %v253_v4, %v251_v2  ;;  %v1319_v9 = vpack.c.bf16 (!%p197_p2), %v258_v6, %v256_v5  ;;  %v255_v10 = vld [vmem:[%s1607_s2 + $0x20] sm:$0xff] (!%p197_p2)  ;;  %v257_v11 = vld [vmem:[%s1607_s2 + $0x30] sm:$0xff] (!%p197_p2)  ;;  %v260_v12 = vld [vmem:[%s1607_s2 + $0x48] sm:$0xff] (!%p197_p2)  ;;  %563 = vrot.lane.b32.xlu1 (!%p197_p2), %v1375_v7, %s1376_s12  ;;  %s1377_s13 = smov (!%p197_p2), 1   ;;  %s1378_s14 = smov (!%p197_p2), 127   ;;  %1365 = vset.pattern.permute.xlu0 (!%p197_p2), %v1384_v34  ;;  %v351_v37 = vand.u32 (!%p197_p2), 127, %v350_v36 }
   0x8   : > { %1316 = vmatprep.subr.bf16.mxu0 (!%p197_p2), %v1315_v3  ;;  %v262_v13 = vld [vmem:[%s1607_s2 + $0x58] sm:$0xff] (!%p197_p2)  ;;  %v1321_v14 = vpack.c.bf16 (!%p197_p2), %v257_v11, %v255_v10  ;;  %v259_v16 = vld [vmem:[%s1607_s2 + $0x40] sm:$0xff] (!%p197_p2)  ;;  %v261_v17 = vld [vmem:[%s1607_s2 + $0x50] sm:$0xff] (!%p197_p2)  ;;  %s1379_s16 = smov (!%p197_p2), 113   ;;  %s1380_s17 = smov (!%p197_p2), 112   ;;  %vm569_vm2 = vcmask (!%p197_p2), 121856  }
   0x9   : > { %1318 = vmatpush1.bf16.msra.mxu0 (!%p197_p2), %v1317_v8  ;;  %v1323_v15 = vpack.c.bf16 (!%p197_p2), %v262_v13, %v260_v12  ;;  %v264_v18 = vld [vmem:[%s1607_s2 + $0x68] sm:$0xff] (!%p197_p2)  ;;  %v266_v19 = vld [vmem:[%s1607_s2 + $0x78] sm:$0xff] (!%p197_p2)  ;;  %v1325_v22 = vpack.c.bf16 (!%p197_p2), %v261_v17, %v259_v16  ;;  %v263_v24 = vld [vmem:[%s1607_s2 + $0x60] sm:$0xff] (!%p197_p2)  ;;  %s1381_s20 = smov (!%p197_p2), 16   ;;  %s1382_s21 = smov (!%p197_p2), 111   ;;  %v352_v39 = vadd.s32 (!%p197_p2), 128, %v351_v37 }
   0xa   : > { %1320 = vmatprep.subr.bf16.mxu0 (!%p197_p2), %v1319_v9  ;;  %v1327_v23 = vpack.c.bf16 (!%p197_p2), %v266_v19, %v264_v18  ;;  %v265_v25 = vld [vmem:[%s1607_s2 + $0x70] sm:$0xff] (!%p197_p2)  ;;  %s1383_s22 = smov (!%p197_p2), 17   ;;  %v1191_v35 = vld [vmem:[%s1609_s4] sm:$0xf] (!%p197_p2)  ;;  %v357_v43 = vand.u32 (!%p197_p2), 15, %v351_v37  ;;  %vm414_vm4 = vcmask (!%p197_p2), 64512  }
   0xb   : > { %v1329_v26 = vpack.c.bf16 (!%p197_p2), %v265_v25, %v263_v24  ;;  %v364_v40 = vand.u32 (!%p197_p2), 15, %v352_v39  ;;  %v1287_v49 = vld [vmem:[%s1608_s3 + $0x8] sm:$0xf] (!%p197_p2)  ;;  %vm660_vm5 = vcmask (!%p197_p2), 7168   ;;  %v1291_v59 = vld [vmem:[%s1608_s3 + $0xc] sm:$0xf] (!%p197_p2) }
   0xc   : > { %vm1511_vm3 = vcmp.ne.s32.totalorder (!%p197_p2), %v357_v43, 15  ;;  %vm1527_vm7 = vcmp.ne.s32.totalorder (!%p197_p2), %v357_v43, 0  ;;  %vm835_vm8 = vcmask (!%p197_p2), 1039360   ;;  %v1295_v1 = vld [vmem:[%s1608_s3 + $0x10] sm:$0xf] (!%p197_p2)  ;;  %vm926_vm9 = vcmask (!%p197_p2), 924672  }
   0xd   : > { %s1620_s19 = smov (!%p228_p3, %s1271_s19), 1  ;;  %1322 = vmatpush1.bf16.msra.mxu0 %v1321_v14  ;;  %vm1507_vm1 = vcmp.ne.s32.totalorder %v364_v40, 15  ;;  %vm1522_vm6 = vcmp.ne.s32.totalorder %v364_v40, 0  ;;  %vm409_vm10 = vcmask 130048   ;;  %v1297_v11 = vld [vmem:[%s1608_s3 + $0x14] sm:$0xf] }
   0xe   : > { %s1313_s15 = sshll.u32 %s1620_s19, 3  ;;  %1324 = vmatprep.subr.bf16.mxu0 %v1323_v15  ;;  %s1276_s8 = sshll.u32 %s1620_s19, 2  ;;  %v1282_v12 = vld [vmem:[%s1608_s3 + $0x4] sm:$0xf]  ;;  %vm1019_vm11 = vcmask 916480   ;;  %vm393_vm12 = vcmask 138240  }
   0xf   : > { %s236_s24 = scalar_lea.vmem %s1606_s1, %s1313_s15  ;;  %s231_s11 = scalar_lea.vmem %s1605_s0, %s1276_s8  ;;  %vm1106_vm13 = vcmask 908288   ;;  %v400_v25 = vld [vmem:[%s1608_s3] sm:$0xf] }
  0x10   : > { %v244_v20 = vld [vmem:[%s236_s24] sm:$0xff]  ;;  %s241_s23 = scalar_lea.vmem %s1610_s5, %s1313_s15 }
  0x11   : > { %v246_v21 = vcombine.high %v244_v20, %v244_v20  ;;  %248 = vst [vmem:[#allocation2 + $0x8] sm:$0xf] %v244_v20  ;;  %1326 = vmatpush1.bf16.msra.mxu0 %v1325_v22  ;;  %v250_v27 = vld [vmem:[%s231_s11] sm:$0xf]  ;;  %v1301_v20 = vld [vmem:[%s1608_s3 + $0x18] sm:$0xf] }
  0x12   : > { %1328 = vmatprep.subr.bf16.mxu0 %v1327_v23 }
  0x13   : > { %249 = vst [vmem:[#allocation2 + $0x10] sm:$0xf] %v246_v21 }
  0x15   : > { %1330 = vmatpush1.bf16.msra.mxu0 %v1329_v26 }
  0x18   : > { %1281 = vmatmul.mubr.msk.f32.vlgmr.msra.gmra.mrb[0].mxu0 %vm267_vm0, %v250_v27 }
  0x19   : > { %482 = vmatprep.mubr.f32.mxu0 %v1375_v7 }
  0x79   : > { %v564_v38 = vpop.permute.xlu1 %563 }
  0xeb   : > { %v337_v28 = vpop.f32.mrb[0].mxu0 }
  0xec   : > { %v344_v29 = vrot.slane %v337_v28, 4  ;;  %v339_v30 = vpop.f32.mrb[1].mxu0  ;;  %v1305_v28 = vld [vmem:[%s1608_s3 + $0x1c] sm:$0xf] }
  0xed   : > { %v345_v31 = vrot.slane %v339_v30, 4  ;;  %v1307_v30 = vld [vmem:[%s1608_s3 + $0x20] sm:$0xf] }
  0xee   : > { %348 = vst [vmem:[#allocation2 + $0x8] sm:$0xf0] %v344_v29 }
  0xef   : > { %349 = vst [vmem:[#allocation2 + $0x10] sm:$0xf0] %v345_v31 }
  0xf5   : > { %v1487_v32 = vld [vmem:[#allocation2 + $0x8] sm:$0xff] }
  0xf6   : > { %656 = vrot.lane.b32.xlu1 %v1487_v32, %s1377_s13  ;;  %565 = vrot.lane.b32.xlu0 %v1487_v32, %s1376_s12  ;;  %v383_v33 = vld [vmem:[#allocation2 + $0x10] sm:$0xff] }
  0xfa   : > { %654 = vrot.lane.b32.xlu1 %v1375_v7, %s1377_s13  ;;  %567 = vrot.lane.b32.xlu0 %v383_v33, %s1376_s12 }
  0xfe   : > { %833 = vrot.lane.b32.xlu1 %v1375_v7, %s1378_s14  ;;  %658 = vrot.lane.b32.xlu0 %v383_v33, %s1377_s13 }
 0x102   : > { %920 = vrot.lane.b32.xlu1 %v1487_v32, %s1379_s16  ;;  %829 = vrot.lane.b32.xlu0 %v1487_v32, %s1378_s14 }
 0x106   : > { %1017 = vrot.lane.b32.xlu1 %v1375_v7, %s1380_s17  ;;  %831 = vrot.lane.b32.xlu0 %v383_v33, %s1378_s14 }
 0x10a   : > { %922 = vrot.lane.b32.xlu1 %v383_v33, %s1379_s16  ;;  %924 = vrot.lane.b32.xlu0 %v1375_v7, %s1379_s16 }
 0x10e   : > { %1013 = vrot.lane.b32.xlu1 %v1487_v32, %s1380_s17  ;;  %405 = vrot.lane.b32.xlu0 %v1487_v32, %s1381_s20 }
 0x112   : > { %407 = vrot.lane.b32.xlu1 %v383_v33, %s1381_s20  ;;  %403 = vrot.lane.b32.xlu0 %v1375_v7, %s1381_s20 }
 0x116   : > { %1104 = vrot.lane.b32.xlu1 %v1375_v7, %s1382_s21  ;;  %1015 = vrot.lane.b32.xlu0 %v383_v33, %s1380_s17 }
 0x11a   : > { %391 = vrot.lane.b32.xlu1 %v383_v33, %s1383_s22  ;;  %389 = vrot.lane.b32.xlu0 %v1487_v32, %s1383_s22 }
 0x11e   : > { %1100 = vrot.lane.b32.xlu1 %v1487_v32, %s1382_s21  ;;  %1102 = vrot.lane.b32.xlu0 %v383_v33, %s1382_s21 }
 0x122   : > { %387 = vrot.lane.b32.xlu0 %v1375_v7, %s1383_s22 }
 0x126   : > { %1194 = vperm.xlu0 %1365, %v1191_v35  }
 0x168   : > { %v657_v41 = vpop.permute.xlu1 %656  ;;  %v566_v42 = vpop.permute.xlu0 %565 }
 0x169   : > { %v570_v50 = vsel %vm569_vm2, %v564_v38, %v566_v42 }
 0x16c   : > { %v655_v45 = vpop.permute.xlu1 %654  ;;  %v568_v46 = vpop.permute.xlu0 %567 }
 0x16d   : > { %v571_v48 = vsel %vm569_vm2, %v566_v42, %v568_v46  ;;  %v661_v56 = vsel %vm660_vm5, %v655_v45, %v657_v41 }
 0x16e   : > { %1288 = vmatprep.subr.msk.mxu1 %vm1507_vm1, %v571_v48 }
 0x16f   : > { %1289 = vmatpush1.msk.msra.mxu1 %vm1511_vm3, %v570_v50 }
 0x170   : > { %v834_v52 = vpop.permute.xlu1 %833  ;;  %1290 = vmatmul.mubr.msk.f32.vlgmr.msra.gmra.mrb[0].mxu1 %vm414_vm4, %v1287_v49  ;;  %v659_v53 = vpop.permute.xlu0 %658 }
 0x171   : > { %v662_v55 = vsel %vm660_vm5, %v657_v41, %v659_v53  ;;  %736 = vmatprep.mubr.f32.mxu1 %v1375_v7 }
 0x172   : > { %1292 = vmatprep.subr.msk.mxu1 %vm1522_vm6, %v662_v55 }
 0x173   : > { %1293 = vmatpush1.msk.msra.mxu1 %vm1527_vm7, %v661_v56 }
 0x174   : > { %v921_v57 = vpop.permute.xlu1 %920  ;;  %750 = vmatprep.subr.mxu1 %v383_v33  ;;  %v830_v58 = vpop.permute.xlu0 %829 }
 0x178   : > { %v1018_v60 = vpop.permute.xlu1 %1017  ;;  %1294 = vmatmul.mubr.msk.f32.vlgmr.msra.gmra.mrb[0].mxu1 %vm414_vm4, %v1291_v59  ;;  %v832_v61 = vpop.permute.xlu0 %831 }
 0x179   : > { %751 = vmatpush1.msra.mxu1 %v1487_v32  ;;  %v837_v62 = vsel %vm835_vm8, %v832_v61, %v834_v52  ;;  %814 = vmatprep.mubr.f32.mxu1 %v1375_v7  ;;  %v836_v2 = vsel %vm835_vm8, %v830_v58, %v832_v61 }
 0x17a   : > { %1298 = vmatprep.subr.msk.mxu1 %vm1507_vm1, %v837_v62 }
 0x17c   : > { %v923_v63 = vpop.permute.xlu1 %922  ;;  %v925_v0 = vpop.permute.xlu0 %924 }
 0x17d   : > { %v928_v5 = vsel %vm926_vm9, %v923_v63, %v925_v0  ;;  %v927_v13 = vsel %vm926_vm9, %v921_v57, %v923_v63 }
 0x180   : > { %v1014_v3 = vpop.permute.xlu1 %1013  ;;  %1296 = vmatmul.mubr.msk.f32.vlgmr.msra.gmra.mrb[0].mxu1 %vm414_vm4, %v1295_v1  ;;  %v406_v4 = vpop.permute.xlu0 %405 }
 0x181   : > { %1299 = vmatpush1.msk.msra.mxu1 %vm1511_vm3, %v836_v2  ;;  %911 = vmatprep.mubr.f32.mxu1 %v1375_v7 }
 0x182   : > { %1302 = vmatprep.subr.msk.mxu1 %vm1522_vm6, %v928_v5 }
 0x184   : > { %v408_v6 = vpop.permute.xlu1 %407  ;;  %v404_v8 = vpop.permute.xlu0 %403 }
 0x185   : > { %v410_v9 = vsel %vm409_vm10, %v404_v8, %v406_v4  ;;  %v411_v10 = vsel %vm409_vm10, %v406_v4, %v408_v6 }
 0x186   : > { %418 = vmatprep.subr.mxu0 %v411_v10 }
 0x187   : > { %419 = vmatpush1.msra.mxu0 %v410_v9 }
 0x188   : > { %v1105_v14 = vpop.permute.xlu1 %1104  ;;  %1300 = vmatmul.mubr.msk.f32.vlgmr.msra.gmra.mrb[0].mxu1 %vm414_vm4, %v1297_v11  ;;  %v1016_v15 = vpop.permute.xlu0 %1015  ;;  %1283 = vmatmul.mubr.msk.f32.vlgmr.msra.gmra.mrb[2].mxu0 %vm414_vm4, %v1282_v12 }
 0x189   : > { %1303 = vmatpush1.msk.msra.mxu1 %vm1527_vm7, %v927_v13  ;;  %v1021_v16 = vsel %vm1019_vm11, %v1016_v15, %v1018_v60  ;;  %1002 = vmatprep.mubr.f32.mxu1 %v1375_v7  ;;  %v1020_v21 = vsel %vm1019_vm11, %v1014_v3, %v1016_v15 }
 0x18a   : > { %1027 = vmatprep.subr.mxu1 %v1021_v16  ;;  %556 = vmatprep.mubr.f32.mxu0 %v1375_v7 }
 0x18c   : > { %v392_v17 = vpop.permute.xlu1 %391  ;;  %v390_v18 = vpop.permute.xlu0 %389 }
 0x18d   : > { %v395_v19 = vsel %vm393_vm12, %v390_v18, %v392_v17 }
 0x18e   : > { %1284 = vmatprep.subr.msk.mxu0 %vm1522_vm6, %v395_v19 }
 0x190   : > { %1304 = vmatmul.mubr.msk.f32.vlgmr.msra.gmra.mrb[0].mxu1 %vm414_vm4, %v1301_v20  ;;  %v1103_v22 = vpop.permute.xlu0 %1102  ;;  %v1101_v26 = vpop.permute.xlu1 %1100 }
 0x191   : > { %1028 = vmatpush1.msra.mxu1 %v1020_v21  ;;  %v1108_v23 = vsel %vm1106_vm13, %v1103_v22, %v1105_v14  ;;  %1091 = vmatprep.mubr.f32.mxu1 %v1375_v7  ;;  %v1107_v29 = vsel %vm1106_vm13, %v1101_v26, %v1103_v22 }
 0x192   : > { %1308 = vmatprep.subr.msk.mxu1 %vm1507_vm1, %v1108_v23 }
 0x194   : > { %v388_v24 = vpop.permute.xlu0 %387 }
 0x195   : > { %v394_v27 = vsel %vm393_vm12, %v388_v24, %v390_v18 }
 0x196   : > { %1285 = vmatpush1.msk.msra.mxu0 %vm1527_vm7, %v394_v27 }
 0x197   : > { %1286 = vmatmul.mubr.msk.f32.vlgmr.msra.gmra.mrb[2].mxu0 %vm414_vm4, %v400_v25 }
 0x198   : > { %1306 = vmatmul.mubr.msk.f32.vlgmr.msra.gmra.mrb[0].mxu1 %vm414_vm4, %v1305_v28 }
 0x199   : > { %1309 = vmatpush1.msk.msra.mxu1 %vm1511_vm3, %v1107_v29  ;;  %1182 = vmatprep.mubr.f32.mxu1 %v1375_v7 }
 0x1a0   : > { %1310 = vmatmul.mubr.msk.f32.vlgmr.msra.gmra.mrb[0].mxu1 %vm414_vm4, %v1307_v30 }
 0x1a5   : > { %v1195_v34 = vpop.permute.xlu0 %1194 }
 0x26a   : > { %v558_v31 = vpop.f32.mrb[2].mxu0 }
 0x26b   : > { %v560_v32 = vpop.f32.mrb[3].mxu0 }
 0x273   : > { %v1184_v33 = vpop.f32.mrb[0].mxu1 }
 0x274   : > { %v1331_v35 = vadd.f32 %v1184_v33, %v558_v31  ;;  %v1186_v36 = vpop.f32.mrb[1].mxu1 }
 0x275   : > { %v1332_v37 = vadd.f32 %v1186_v36, %v560_v32 }
 0x276   : > { %v1197_v38 = vadd.f32 %v1331_v35, %v1195_v34 }
 0x277   : > { %v1198_v39 = vadd.f32 %v1332_v37, %v1195_v34 }
 0x279   : > { %v1201_v7 = vcombine.low %v1197_v38, %v1198_v39 }
 0x27b   : > { %1203 = vst [vmem:[%s241_s23] sm:$0xff] %v1201_v7 }
 0x27c PF: > { %s15_s18 = sadd.s32 1, %s1373_s18  }
 0x27d   : > { %p12_p4 = scmp.ge.s32.totalorder %s15_s18, 4  }
 0x27f   :  { %14 = sbr.rel (!%p12_p4) target bundleno = 1 (0x1), region = 81 }

</bundles_post_ra>
